<compile_context>
chip_gen: v7x
topology: tpu7x:2x2x1
jax: 0.10.0
libtpu: 0.0.40
codegen_flags: <defaults>
</compile_context>

<pallas_src>
import functools
from typing import NamedTuple

import jax
import jax.numpy as jnp
from jax.experimental import pallas as pl
from jax.experimental.pallas import tpu as pltpu


def _round_up(x: int, m: int) -> int:
    return (x + m - 1) // m * m


def _ceil_div(a: int, b: int) -> int:
    return -(-a // b)


class _Plan(NamedTuple):
    tm: int
    tn: int
    tk: int
    bp: int
    fp: int
    kp: int
    vmem_limit: int


def _vmem_bytes(tm: int, tn: int, tk: int, itemsize: int) -> int:
    # Double-buffered X / W / B / out tiles + worst-case f32 accumulator.
    return (2 * tm * tk * itemsize          # X tile
            + 2 * tk * tn * itemsize        # W tile
            + 2 * tn * itemsize             # B tile
            + 2 * tm * tn * itemsize        # out tile
            + tm * tn * 4)                  # acc scratch (only used if r > 1)


def _split(dim_aligned: int, max_tile: int, align: int):
    """Evenly split an aligned dim into tiles <= max_tile, tiles multiple of align."""
    n_tiles = max(1, _ceil_div(dim_aligned, max_tile))
    tile = _round_up(_ceil_div(dim_aligned, n_tiles), align)
    return tile, tile * n_tiles


def make_plan(batch: int, in_features: int, out_features: int, dtype,
              tile_m: int = 512, tile_n: int = 512, tile_k: int = 512,
              vmem_budget_bytes: int = 40 * 2**20) -> _Plan:
    """Pick MXU/lane-aligned tiles that divide the padded dims and fit VMEM."""
    itemsize = jnp.dtype(dtype).itemsize
    sub = 16 if itemsize == 2 else 8        # bf16: 16-row align avoids packing relayouts
    tm, bp = _split(_round_up(batch, sub), tile_m, sub)
    tn, fp = _split(_round_up(out_features, 128), tile_n, 128)
    kp0 = _round_up(in_features, 128)

    def fits(tk):
        return _vmem_bytes(tm, tn, tk, itemsize) <= vmem_budget_bytes

    if fits(kp0):
        # Collapse the reduction: whole in_features in one pass, W resident per (k, n).
        tk, kp = kp0, kp0
    else:
        cap = max(128, _round_up(tile_k, 128))
        while cap > 128 and not fits(cap):
            cap = max(128, (cap // 2) // 128 * 128)
        tk, kp = _split(kp0, cap, 128)

    vmem_limit = int(_vmem_bytes(tm, tn, tk, itemsize)) + (4 << 20)  # + margin
    return _Plan(tm, tn, tk, bp, fp, kp, vmem_limit)


# ----------------------------------------------------------------------------
# Kernels
# ----------------------------------------------------------------------------
def _mlpk_kernel_fused(x_ref, w_ref, b_ref, o_ref):
    # x_ref: (tm, kp)  w_ref: (kp, tn)  b_ref: (1, tn)  o_ref: (tm, tn)
    y = jnp.dot(x_ref[...], w_ref[...], preferred_element_type=jnp.float32)
    y = y + b_ref[...].astype(jnp.float32)
    o_ref[...] = jnp.maximum(y, 0.0).astype(o_ref.dtype)


def _mlpk_kernel_acc(x_ref, w_ref, b_ref, o_ref, acc_ref):
    # Split-reduction variant: f32 accumulator across the in_features (r) axis.
    r = pl.program_id(3)
    prod = jnp.dot(x_ref[...], w_ref[...], preferred_element_type=jnp.float32)

    @pl.when(r == 0)
    def _():
        acc_ref[...] = prod                 # write directly, no zero-fill + reload

    @pl.when(r > 0)
    def _():
        acc_ref[...] += prod

    @pl.when(r == pl.num_programs(3) - 1)
    def _():
        y = acc_ref[...] + b_ref[...].astype(jnp.float32)
        o_ref[...] = jnp.maximum(y, 0.0).astype(o_ref.dtype)


# ----------------------------------------------------------------------------
# Wrappers
# ----------------------------------------------------------------------------
def prepare_params(W, B, plan: _Plan):
    """Pad parameters to tile multiples once (hoisted out of the per-call forward)."""
    k, in_f, out_f = W.shape
    W_p = jnp.pad(W, ((0, 0), (0, plan.kp - in_f), (0, plan.fp - out_f)))
    B_p = jnp.pad(B, ((0, 0), (0, plan.fp - out_f)))[:, None, :]   # (k, 1, fp)
    return W_p, B_p


@functools.partial(jax.jit, static_argnames=("plan", "out_features"))
def mlpk_forward_padded(x, W_p, B_p, plan: _Plan, out_features: int):
    """x: (batch, k, in_f); W_p: (k, kp, fp); B_p: (k, 1, fp) -> (batch, k, out_f)."""
    batch, k, in_f = x.shape
    tm, tn, tk = plan.tm, plan.tn, plan.tk
    bp, fp, kp = plan.bp, plan.fp, plan.kp
    dtype = x.dtype
    itemsize = jnp.dtype(dtype).itemsize

    # TODO(synk): in a full MLPk stack keep activations k-major across layers so
    # this transpose/pad and the output transpose below happen once at model
    # entry/exit instead of per layer (pure HBM bandwidth).
    x_k = jnp.transpose(x, (1, 0, 2))                              # (k, batch, in_f)
    x_k = jnp.pad(x_k, ((0, 0), (0, bp - batch), (0, kp - in_f)))

    cost = pl.CostEstimate(
        flops=2 * k * bp * kp * fp,
        transcendentals=0,
        bytes_accessed=itemsize * (x_k.size + W_p.size + B_p.size + k * bp * fp))

    # Grid order (n, k, m[, r]): n leads so v7x megacore shards a many-tile axis
    # (not a tiny k); m is innermost among parallel axes so the W block index is
    # constant across it (no W re-DMA per batch tile).
    grid_nm = (fp // tn, k, bp // tm)
    n_r = kp // tk

    if n_r == 1:
        out_k = pl.pallas_call(
            _mlpk_kernel_fused,
            out_shape=jax.ShapeDtypeStruct((k, bp, fp), dtype),
            grid=grid_nm,
            in_specs=[
                pl.BlockSpec((None, tm, kp), lambda n, kk, m: (kk, m, 0)),
                pl.BlockSpec((None, kp, tn), lambda n, kk, m: (kk, 0, n)),
                pl.BlockSpec((None, 1, tn), lambda n, kk, m: (kk, 0, n)),
            ],
            out_specs=pl.BlockSpec((None, tm, tn), lambda n, kk, m: (kk, m, n)),
            compiler_params=pltpu.CompilerParams(
                dimension_semantics=("parallel", "parallel", "parallel"),
                vmem_limit_bytes=plan.vmem_limit),
            cost_estimate=cost,
        )(x_k, W_p, B_p)
    else:
        out_k = pl.pallas_call(
            _mlpk_kernel_acc,
            out_shape=jax.ShapeDtypeStruct((k, bp, fp), dtype),
            grid=grid_nm + (n_r,),
            in_specs=[
                pl.BlockSpec((None, tm, tk), lambda n, kk, m, r: (kk, m, r)),
                pl.BlockSpec((None, tk, tn), lambda n, kk, m, r: (kk, r, n)),
                pl.BlockSpec((None, 1, tn), lambda n, kk, m, r: (kk, 0, n)),
            ],
            out_specs=pl.BlockSpec((None, tm, tn), lambda n, kk, m, r: (kk, m, n)),
            scratch_shapes=[pltpu.VMEM((tm, tn), jnp.float32)],
            compiler_params=pltpu.CompilerParams(
                dimension_semantics=("parallel", "parallel", "parallel", "arbitrary"),
                vmem_limit_bytes=plan.vmem_limit),
            cost_estimate=cost,
        )(x_k, W_p, B_p)

    # Back to the PyTorch (batch, k, out_f) layout; drop padding.
    return jnp.transpose(out_k, (1, 0, 2))[:batch, :, :out_features]


def mlpk_forward(x, W, B, **plan_kwargs):
    """Convenience wrapper: plan + pad params + run the kernel."""
    batch, k, in_f = x.shape
    out_f = W.shape[-1]
    plan = make_plan(batch, in_f, out_f, x.dtype, **plan_kwargs)
    W_p, B_p = prepare_params(W, B, plan)
    return mlpk_forward_padded(x, W_p, B_p, plan, out_f)


def _rel_err(a, b):
    a = jnp.asarray(a, jnp.float32)
    b = jnp.asarray(b, jnp.float32)
    return float(jnp.linalg.norm(a - b) / (jnp.linalg.norm(b) + 1e-12))


if __name__ == "__main__":
    key = jax.random.PRNGKey(0)
    k1, k2, k3 = jax.random.split(key, 3)

    # --- 1) small shapes matching the module's toy regime (f32, fused path) ---
    batch, k, in_f, out_f = 8, 4, 16, 32
    kx, kw, kb = jax.random.split(k1, 3)
    W = jax.random.uniform(kw, (k, in_f, out_f), minval=-1.0, maxval=1.0,
                           dtype=jnp.float32)
    B = jax.random.uniform(kb, (k, out_f), minval=-1.0, maxval=1.0,
                           dtype=jnp.float32)
    X = jax.random.normal(kx, (batch, k, in_f), dtype=jnp.float32)

    out = jax.block_until_ready(mlpk_forward(X, W, B))
    ref = jnp.maximum(
        jnp.einsum('bki,kio->bko', X, W, precision='highest') + B[None, :, :], 0.0)
    assert out.shape == (batch, k, out_f)
    assert _rel_err(out, ref) < 1e-2, _rel_err(out, ref)

    # --- 2) awkward multi-tile shapes: exact-fit tiles, no over-padding (f32) --
    b2, kk2, i2, o2 = 300, 3, 300, 384
    kx2, kw2, kb2 = jax.random.split(k2, 3)
    W2 = jax.random.uniform(kw2, (kk2, i2, o2), minval=-1.0, maxval=1.0,
                            dtype=jnp.float32)
    B2 = jax.random.uniform(kb2, (kk2, o2), minval=-1.0, maxval=1.0,
                            dtype=jnp.float32)
    X2 = jax.random.normal(kx2, (b2, kk2, i2), dtype=jnp.float32)

    out2 = jax.block_until_ready(mlpk_forward(X2, W2, B2))
    ref2 = jnp.maximum(
        jnp.einsum('bki,kio->bko', X2, W2, precision='highest') + B2[None, :, :], 0.0)
    assert out2.shape == (b2, kk2, o2)
    assert _rel_err(out2, ref2) < 1e-2, _rel_err(out2, ref2)

    # --- 3) bf16 operands + forced split reduction (exercises the acc kernel) --
    b3, kk3, i3, o3 = 256, 2, 1024, 512
    kx3, kw3, kb3 = jax.random.split(k3, 3)
    W3 = jax.random.uniform(kw3, (kk3, i3, o3), minval=-1.0, maxval=1.0,
                            dtype=jnp.float32).astype(jnp.bfloat16)
    B3 = jax.random.uniform(kb3, (kk3, o3), minval=-1.0, maxval=1.0,
                            dtype=jnp.float32).astype(jnp.bfloat16)
    X3 = jax.random.normal(kx3, (b3, kk3, i3), dtype=jnp.float32).astype(jnp.bfloat16)

    out3 = jax.block_until_ready(
        mlpk_forward(X3, W3, B3, tile_m=128, tile_n=256, tile_k=256,
                     vmem_budget_bytes=1 << 20))
    ref3 = jnp.maximum(
        jnp.einsum('bki,kio->bko',
                   X3.astype(jnp.float32), W3.astype(jnp.float32),
                   precision='highest') + B3.astype(jnp.float32)[None, :, :], 0.0)
    assert out3.shape == (b3, kk3, o3)
    assert _rel_err(out3, ref3) < 2e-2, _rel_err(out3, ref3)

    print("KERNEL_OK")
</pallas_src>

<mosaic_0001>
module attributes {stable_mosaic.version = 11 : i64} {
  func.func @_mlpk_kernel_fused(%arg0: i32, %arg1: i32, %arg2: i32, %arg3: memref<1x8x128xf32, #tpu.memory_space<vmem>>, %arg4: memref<1x128x128xf32, #tpu.memory_space<vmem>>, %arg5: memref<1x1x128xf32, #tpu.memory_space<vmem>>, %arg6: memref<1x8x128xf32, #tpu.memory_space<vmem>>) attributes {dimension_semantics = [#tpu.dimension_semantics<parallel>, #tpu.dimension_semantics<parallel>, #tpu.dimension_semantics<parallel>], iteration_bounds = array<i64: 1, 4, 1>, scalar_prefetch = 0 : i64, scratch_operands = 0 : i64, tpu.core_type = #tpu.core_type<tc>, window_params = [{transform_indices = @transform_0, window_bounds = array<i64: 1, 8, 128>}, {transform_indices = @transform_1, window_bounds = array<i64: 1, 128, 128>}, {transform_indices = @transform_2, window_bounds = array<i64: 1, 1, 128>}, {transform_indices = @transform_3, window_bounds = array<i64: 1, 8, 128>}]} {
    %c0 = arith.constant 0 : index
    %c0_0 = arith.constant 0 : index
    %c0_1 = arith.constant 0 : index
    %0 = vector.load %arg3[%c0, %c0_0, %c0_1] : memref<1x8x128xf32, #tpu.memory_space<vmem>>, vector<1x8x128xf32>
    %1 = vector.shape_cast %0 : vector<1x8x128xf32> to vector<8x128xf32>
    %c0_2 = arith.constant 0 : index
    %c0_3 = arith.constant 0 : index
    %c0_4 = arith.constant 0 : index
    %2 = vector.load %arg4[%c0_2, %c0_3, %c0_4] : memref<1x128x128xf32, #tpu.memory_space<vmem>>, vector<1x128x128xf32>
    %3 = vector.shape_cast %2 : vector<1x128x128xf32> to vector<128x128xf32>
    %cst = arith.constant dense<0.000000e+00> : vector<8x128xf32>
    %4 = tpu.matmul %1, %3, %cst {dimension_numbers = #tpu.dot_dimension_numbers<[1], [0], [0], [1], [0, 0, 1, 1], [], []>} : vector<8x128xf32>, vector<128x128xf32>, vector<8x128xf32> -> vector<8x128xf32>
    %c0_5 = arith.constant 0 : index
    %c0_6 = arith.constant 0 : index
    %c0_7 = arith.constant 0 : index
    %5 = vector.load %arg5[%c0_5, %c0_6, %c0_7] : memref<1x1x128xf32, #tpu.memory_space<vmem>>, vector<1x1x128xf32>
    %6 = vector.shape_cast %5 : vector<1x1x128xf32> to vector<1x128xf32>
    %7 = vector.broadcast %6 : vector<1x128xf32> to vector<8x128xf32>
    %8 = arith.addf %4, %7 : vector<8x128xf32>
    %cst_8 = arith.constant 0.000000e+00 : f32
    %9 = vector.broadcast %cst_8 : f32 to vector<8x128xf32>
    %10 = arith.maximumf %8, %9 : vector<8x128xf32>
    %c0_9 = arith.constant 0 : index
    %c0_10 = arith.constant 0 : index
    %c0_11 = arith.constant 0 : index
    %11 = vector.load %arg6[%c0_9, %c0_10, %c0_11] : memref<1x8x128xf32, #tpu.memory_space<vmem>>, vector<1x8x128xf32>
    %12 = vector.shape_cast %11 : vector<1x8x128xf32> to vector<8x128xf32>
    %13 = vector.shape_cast %10 : vector<8x128xf32> to vector<1x8x128xf32>
    tpu.vector_store %arg6[%c0_9, %c0_10, %c0_11], %13 {strides = array<i32>} : memref<1x8x128xf32, #tpu.memory_space<vmem>>, vector<1x8x128xf32>,
    return
  }
  func.func @transform_0(%arg0: i32, %arg1: i32, %arg2: i32) -> (i32, i32, i32) {
    %c0_i32 = arith.constant 0 : i32
    %c0_i32_0 = arith.constant 0 : i32
    return %arg1, %arg2, %c0_i32 : i32, i32, i32
  }
  func.func @transform_1(%arg0: i32, %arg1: i32, %arg2: i32) -> (i32, i32, i32) {
    %c0_i32 = arith.constant 0 : i32
    %c0_i32_0 = arith.constant 0 : i32
    return %arg1, %c0_i32, %arg0 : i32, i32, i32
  }
  func.func @transform_2(%arg0: i32, %arg1: i32, %arg2: i32) -> (i32, i32, i32) {
    %c0_i32 = arith.constant 0 : i32
    %c0_i32_0 = arith.constant 0 : i32
    return %arg1, %c0_i32, %arg0 : i32, i32, i32
  }
  func.func @transform_3(%arg0: i32, %arg1: i32, %arg2: i32) -> (i32, i32, i32) {
    %c0_i32 = arith.constant 0 : i32
    return %arg1, %arg2, %arg0 : i32, i32, i32
  }
}

</mosaic_0001>

<bundles_post_ra>
// kernel: mlpk_forward_padded.1
= control target key start
LH: loop header
LB: loop body
LE: loop exit
PB: predicated region body
PF: predicated region fallthrough
CT: control target
= control target key end

     0   :  { %8 = vsyncpa [#allocation3], 0  ;;  %s908_s0 = inlined_call_operand.vmem [shape: f32[4,8,128], index: 0, kind: input, shape index: {}]   ;;  %s909_s1 = inlined_call_operand.hbm [shape: f32[4,128,128], index: 1, kind: input, shape index: {}]   ;;  %s910_s2 = inlined_call_operand.vmem [shape: f32[4,1,128], index: 2, kind: input, shape index: {}]   ;;  %s911_s3 = inlined_call_operand.vmem [shape: f32[4,8,128], index: 3, kind: output, shape index: {}]  }
   0x1   :  { %10 = vsyncpa [#allocation3 + $0x1], 0  ;;  %s760_s12 = smov 0   ;;  %s762_s13 = smov 0  }
   0x2   :  { %s764_s14 = smov 0   ;;  %s766_s15 = smov 0  }
   0x3   :  { %s768_s16 = smov 0   ;;  %s770_s17 = smov 0  }
   0x4 LB: > { %s501_s18 = sadd.s32 4294967295, %s732_s17   ;;  %s31_s19 = sadd.s32 1, %s728_s16  ;;  %s732_s17 = sphi %s770_s17, %s16_s17   ;;  %s728_s16 = sphi %s768_s16, %s919_s16   ;;  %s724_s15 = sphi %s766_s15, %s918_s15   ;;  %s720_s14 = sphi %s764_s14, %s917_s14   ;;  %s716_s13 = sphi %s762_s13, %s916_s13   ;;  %s712_s12 = sphi %s760_s12, %s915_s12  }
   0x5   : > { %p33_p0 = scmp.ge.s32.totalorder %s31_s19, 4  ;;  %s72_s20 = sadd.s32 1, %s720_s14 }
   0x6   : > { %p79_p1 = scmp.ne.s32.totalorder %s720_s14, %s716_s13  ;;  %p80_p2 = scmp.eq.s32.totalorder %s732_s17, 0 }
   0x7   : > { %s921_s19 = smov (%p33_p0, %s31_s19), 0  ;;  %p85_p4 = scmp.ne.s32.totalorder %s716_s13, %s712_s12 }
   0x8   : > { %p796_p3 = por %p80_p2, %p79_p1  ;;  %s67_s22 = ssub.s32 %s728_s16, %s921_s19 }
   0x9   : > { %p86_p5 = scmp.eq.s32.totalorder %s501_s18, 0  ;;  %p70_p6 = scmp.eq.s32.totalorder %s67_s22, 0 }
   0xa   : > { %p598_p8 = scmp.lt.s32.totalorder %s732_s17, 4  ;;  %s177_s25 = sand.u32 1, %s720_s14  }
   0xb   : > { %p803_p7 = por %p86_p5, %p85_p4  ;;  %s515_s26 = sshll.u32 %s728_s16, 11 }
   0xc   : > { %s809_s24 = scalar_select %p70_p6, %s720_s14, %s72_s20  }
   0xd   : > { %s505_s27 = sshll.u32 %s177_s25, 7  ;;  %s816_s30 = scalar_lea.hbm %s909_s1, %s515_s26 }
   0xe   : > { %s181_s4 = scalar_lea.vmem [#allocation2], %s505_s27  ;;  %p820_p9 = pnand %p598_p8, %p796_p3 }
   0xf   : > { %s189_s5 = sshll.u32 %s181_s4, 4  ;;  %s826_s7 = scalar_lea.sflag [#allocation3], %s177_s25  ;;  %s824_s5 = int_to_ptr.vmem [resolvable:$true] %s189_s5 }
  0x10   : > { %s652_s8 = scalar_lea.hbm %s816_s30, 2048  ;;  %p654_p11 = pneg %p820_p9 }
  0x11   : > { %p653_p10 = scmp.ne.s32.totalorder %s816_s30, %s652_s8  ;;  %s657_s11 = scalar_lea.hbm %s909_s1, 8192 }
  0x12   : > { %p658_p0 = scmp.lt.u32.totalorder %s816_s30, %s909_s1  ;;  %p659_p1 = scmp.lt.u32.totalorder %s657_s11, %s652_s8 }
  0x13   : > { %p655_p12 = pnand %p654_p11, %p653_p10  ;;  %p661_p3 = scmp.lt.u32.totalorder %s652_s8, %s816_s30 }
  0x14   : > { %p660_p2 = por %p659_p1, %p658_p0 }
  0x15   : > { %p656_p13 = pneg %p655_p12 }
  0x16   : > { %p662_p4 = por %p661_p3, %p660_p2 }
  0x18   : > { %p663_p5 = pnand %p662_p4, %p656_p13 }
  0x1a   : > { %666 = shalt.err (!%p663_p5)
}
  0x1b   : > { %s667_s20 = scalar_lea.vmem %s824_s5, 2048  ;;  %s734_s21 = smov [#allocation2]  }
  0x1c   : > { %p668_p6 = scmp.ne.s32.totalorder %s824_s5, %s667_s20  ;;  %s672_s22 = sshll.u32 %s734_s21, 4  ;;  %s673_s22 = int_to_ptr.vmem [resolvable:$false] %s672_s22 }
  0x1d   : > { %s674_s25 = scalar_lea.vmem %s673_s22, 4096  ;;  %p675_p12 = scmp.lt.s32.totalorder %s824_s5, %s673_s22 }
  0x1e   : > { %p670_p8 = pnand %p668_p6, %p654_p11  ;;  %p676_p0 = scmp.lt.s32.totalorder %s674_s25, %s667_s20 }
  0x20   : > { %p671_p10 = pneg %p670_p8  ;;  %p677_p1 = por %p676_p0, %p675_p12 }
  0x22   : > { %p678_p2 = pnand %p677_p1, %p671_p10 }
  0x24   : > { %681 = shalt.err (!%p678_p2)
}
  0x25   : > { %s735_s26 = smov 128   ;;  %s736_s27 = smov 8  }
  0x26   : > { %597 = dma.hbm_to_vmem [thread:$0]  (!%p820_p9), %s816_s30, 2048, %s824_s5, %s826_s7, %s735_s26, %s735_s26, %s736_s27  }
  0x27   : > { %p508_p11 = scmp.ge.s32.totalorder %s732_s17, 1  ;;  %p206_p13 = scmp.lt.s32.totalorder %s732_s17, 5 }
  0x29   : > { %p207_p3 = pnand %p508_p11, %p206_p13 }
  0x2a   : > { %s212_s28 = sand.u32 (!%p207_p3), 1, %s716_s13  }
  0x2b   : > { %210 = sbr.rel (%p207_p3) target bundleno = 302 (0x12e), region = 32  ;;  %s509_s29 = sshll.u32 (!%p207_p3), %s212_s28, 7 }
  0x2c   : > { %s213_s4 = scalar_lea.sflag (!%p207_p3), [#allocation3], %s212_s28  ;;  %s857_s8 = scalar_lea.vmem (!%p207_p3), [#allocation2], %s509_s29 }
  0x32   : > { %707 = dma.done.wait (%p803_p7), %s213_s4, 2048  }
  0x33   : > { %709 = vsyncadd (%p803_p7), %s213_s4, 4294965248  ;;  %v737_v0 = vmov 0.0|0.0   ;;  %vm738_vm0 = vmmov 0   ;;  %v739_v1 = vmov 0.0   ;;  %v281_v2 = vld [vmem:[%s857_s8] sm:$0xff]  ;;  %v282_v3 = vld [vmem:[%s857_s8 + $0x8] sm:$0xff] }
  0x34   : > { %568 = vmatprep.subr.bf16.mxu0 %v737_v0  ;;  %565 = vmatprep.mubr.msk.f32.mxu0 %vm738_vm0, %v739_v1  ;;  %v283_v4 = vld [vmem:[%s857_s8 + $0x10] sm:$0xff]  ;;  %v569_v5 = vpack.c.bf16 %v282_v3, %v281_v2  ;;  %v284_v6 = vld [vmem:[%s857_s8 + $0x18] sm:$0xff]  ;;  %v285_v8 = vld [vmem:[%s857_s8 + $0x20] sm:$0xff]  ;;  %p257_p7 = scmp.lt.s32.totalorder %s724_s15, 3 }
  0x35   : > { %v572_v7 = vpack.c.bf16 %v284_v6, %v283_v4  ;;  %v286_v9 = vld [vmem:[%s857_s8 + $0x28] sm:$0xff]  ;;  %v287_v11 = vld [vmem:[%s857_s8 + $0x30] sm:$0xff]  ;;  %v288_v12 = vld [vmem:[%s857_s8 + $0x38] sm:$0xff] }
  0x36   : > { %570 = vmatpush3.bf16.msra.mxu0 %v569_v5  ;;  %v575_v10 = vpack.c.bf16 %v286_v9, %v285_v8  ;;  %v578_v13 = vpack.c.bf16 %v288_v12, %v287_v11  ;;  %v289_v14 = vld [vmem:[%s857_s8 + $0x40] sm:$0xff]  ;;  %v290_v15 = vld [vmem:[%s857_s8 + $0x48] sm:$0xff]  ;;  %v291_v17 = vld [vmem:[%s857_s8 + $0x50] sm:$0xff]  ;;  %s923_s15 = smov (!%p257_p7, %s724_s15), 3 }
  0x37   : > { %571 = vmatprep.subr.bf16.mxu0 %v737_v0  ;;  %v581_v16 = vpack.c.bf16 %v290_v15, %v289_v14  ;;  %v292_v18 = vld [vmem:[%s857_s8 + $0x58] sm:$0xff]  ;;  %v293_v20 = vld [vmem:[%s857_s8 + $0x60] sm:$0xff]  ;;  %v294_v21 = vld [vmem:[%s857_s8 + $0x68] sm:$0xff]  ;;  %s510_s23 = sshll.u32 %s923_s15, 3  ;;  %s269_s10 = scalar_lea.vmem %s910_s2, %s923_s15 }
  0x38   : > { %v584_v19 = vpack.c.bf16 %v292_v18, %v291_v17  ;;  %v587_v22 = vpack.c.bf16 %v294_v21, %v293_v20  ;;  %v295_v23 = vld [vmem:[%s857_s8 + $0x70] sm:$0xff]  ;;  %v296_v24 = vld [vmem:[%s857_s8 + $0x78] sm:$0xff]  ;;  %s263_s6 = scalar_lea.vmem %s908_s0, %s510_s23  ;;  %v512_v27 = vld [vmem:[%s269_s10] ss:$0 sm:$0xff]  ;;  %s279_s18 = scalar_lea.vmem %s911_s3, %s510_s23 }
  0x39   : > { %v590_v25 = vpack.c.bf16 %v296_v24, %v295_v23  ;;  %v280_v26 = vld [vmem:[%s263_s6] sm:$0xff] }
  0x3a   : > { %573 = vmatpush3.bf16.msra.mxu0 %v572_v7 }
  0x3b   : > { %574 = vmatprep.subr.bf16.mxu0 %v737_v0 }
  0x3e   : > { %576 = vmatpush3.bf16.msra.mxu0 %v575_v10 }
  0x3f   : > { %577 = vmatprep.subr.bf16.mxu0 %v737_v0 }
  0x42   : > { %579 = vmatpush3.bf16.msra.mxu0 %v578_v13 }
  0x43   : > { %580 = vmatprep.subr.bf16.mxu0 %v737_v0 }
  0x46   : > { %582 = vmatpush3.bf16.msra.mxu0 %v581_v16 }
  0x47   : > { %583 = vmatprep.subr.bf16.mxu0 %v737_v0 }
  0x4a   : > { %585 = vmatpush3.bf16.msra.mxu0 %v584_v19 }
  0x4b   : > { %586 = vmatprep.subr.bf16.mxu0 %v737_v0 }
  0x4e   : > { %588 = vmatpush3.bf16.msra.mxu0 %v587_v22 }
  0x4f   : > { %589 = vmatprep.subr.bf16.mxu0 %v737_v0 }
  0x52   : > { %591 = vmatpush3.bf16.msra.mxu0 %v590_v25 }
  0x55   : > { %566 = vmatmul.mubr.f32.vlgmr.msra.gmra.mrb[0].mxu0 %v280_v26 }
 0x128   : > { %v370_v28 = vpop.f32.mrb[0].mxu0 }
 0x129   : > { %v371_v29 = vadd.f32 %v512_v27, %v370_v28  ;;  %v567_v30 = vpop.f32.mrb[1].mxu0 }
 0x12b   : > { %v374_v31 = vmax.f32 %v371_v29, 0.0 }
 0x12d   : > { %375 = vst [vmem:[%s279_s18] sm:$0xff] %v374_v31 }
 0x12e PF: > { %s16_s17 = sadd.s32 1, %s732_s17   ;;  %s915_s12 = smov %s716_s13 }
 0x12f   : > { %p13_p9 = scmp.ge.s32.totalorder %s16_s17, 6   ;;  %s916_s13 = smov %s720_s14 }
 0x130   : > { %s917_s14 = smov %s809_s24  ;;  %s918_s15 = smov %s728_s16 }
 0x131   : > { %s919_s16 = smov %s921_s19  ;;  %15 = sbr.rel (!%p13_p9) target bundleno = 4 (0x4), region = 78 }
 0x138   :  { %407 = vsyncpa [#allocation3], 1 }
 0x139   :  { %409 = vsyncpa [#allocation3 + $0x1], 1 }

</bundles_post_ra>
